<compile_context>
chip_gen: v5e
topology: v5e:2x2
jax: 0.10.0
libtpu: 0.0.40
codegen_flags: <defaults>
</compile_context>

<pallas_src>
import math

import jax
import jax.numpy as jnp
from jax.experimental import pallas as pl
from jax.experimental.pallas import tpu as pltpu

HIDDEN = 14


def _round_up(n, m):
    return ((n + m - 1) // m) * m


def fnn_kernel(x_ref, w1_ref, b1_ref, w2_ref, b2_ref, w3_ref, b3_ref, o_ref):
    """Fused feature-major FNN on one batch tile.

    x_ref : [F, TILE_B] bf16   (batch on the lane axis)
    w1    : [14, F] bf16,  b1: [14, 1] f32
    w2    : [14, 14] f32,  b2: [14, 1] f32
    w3    : [1, 14] f32,   b3: [1, 1] f32
    o_ref : [1, TILE_B] f32    (lane-dense output)
    """
    # bf16 x bf16 -> f32 accumulate on the MXU (no VPU upcast of the x stream).
    h1 = jnp.dot(w1_ref[...], x_ref[...],
                 preferred_element_type=jnp.float32) + b1_ref[...]
    h1 = jnp.maximum(h1, 0.0)
    h2 = jnp.dot(w2_ref[...], h1, preferred_element_type=jnp.float32) + b2_ref[...]
    h2 = jnp.maximum(h2, 0.0)
    z = jnp.dot(w3_ref[...], h2, preferred_element_type=jnp.float32) + b3_ref[...]
    # Numerically-stable sigmoid; exp path runs on the EUP.
    o_ref[...] = jax.nn.sigmoid(z).astype(o_ref.dtype)


def fnn_forward(x, params, *, tile_b=128 * 1024):
    """x: [B, F] float32 -> [B, 1] float32 (matches the PyTorch forward)."""
    w1, b1, w2, b2, w3, b3 = params
    B, F = x.shape

    # Lane-dense batch tile: multiple of 128, no bigger than the (padded) batch.
    b_pad128 = _round_up(B, 128)
    tile_b = min(_round_up(tile_b, 128), b_pad128)
    # If the whole (padded) batch would fit in one tile but spans >= 2 lane tiles,
    # split it so the grid has >= 2 steps (lets v7x use both TensorCores).
    if tile_b == b_pad128 and b_pad128 >= 256:
        tile_b = _round_up(b_pad128 // 2, 128)
    n_tiles = pl.cdiv(b_pad128, tile_b)
    b_pad = n_tiles * tile_b

    # Feature-major bf16 input stream: the f32->bf16 cast is fused into the same
    # wrapper transpose/pad pass, so the extra HBM pre-pass writes half the bytes.
    # TODO(synk): ideally the data pipeline would hand x over feature-major/bf16
    # already, removing this pre-pass entirely.
    x_t = jnp.pad(x.T.astype(jnp.bfloat16), ((0, 0), (0, b_pad - B)))
    w1_bf = w1.astype(jnp.bfloat16)  # tiny, VMEM-resident; native MXU bf16 path.

    const = lambda i: (0, 0)  # weights/biases stay resident in VMEM across the grid
    out = pl.pallas_call(
        fnn_kernel,
        out_shape=jax.ShapeDtypeStruct((1, b_pad), jnp.float32),
        grid=(n_tiles,),
        in_specs=[
            pl.BlockSpec((F, tile_b), lambda i: (0, i)),      # x^T batch tile (bf16)
            pl.BlockSpec((HIDDEN, F), const),                 # W1 (bf16)
            pl.BlockSpec((HIDDEN, 1), const),                 # b1
            pl.BlockSpec((HIDDEN, HIDDEN), const),            # W2
            pl.BlockSpec((HIDDEN, 1), const),                 # b2
            pl.BlockSpec((1, HIDDEN), const),                 # W3
            pl.BlockSpec((1, 1), const),                      # b3
        ],
        out_specs=pl.BlockSpec((1, tile_b), lambda i: (0, i)),
        compiler_params=pltpu.CompilerParams(
            dimension_semantics=("parallel",)),
    )(x_t, w1_bf, b1, w2, b2, w3, b3)

    # Back to the PyTorch output shape [B, 1], dropping batch padding.
    return out[:, :B].T


def init_params(key, input_size):
    """Deterministic init mimicking nn.Linear default U(-1/sqrt(fan_in), ...).

    Weights are stored in PyTorch layout [out, in], biases as [out, 1].
    """
    def linear(key, fan_in, fan_out):
        kw, kb = jax.random.split(key)
        bound = 1.0 / math.sqrt(fan_in)
        w = jax.random.uniform(kw, (fan_out, fan_in), jnp.float32, -bound, bound)
        b = jax.random.uniform(kb, (fan_out, 1), jnp.float32, -bound, bound)
        return w, b

    k1, k2, k3 = jax.random.split(key, 3)
    w1, b1 = linear(k1, input_size, HIDDEN)
    w2, b2 = linear(k2, HIDDEN, HIDDEN)
    w3, b3 = linear(k3, HIDDEN, 1)
    return w1, b1, w2, b2, w3, b3


def fnn_reference(x, params):
    w1, b1, w2, b2, w3, b3 = params
    h1 = jnp.maximum(x @ w1.T + b1.T, 0.0)
    h2 = jnp.maximum(h1 @ w2.T + b2.T, 0.0)
    return jax.nn.sigmoid(h2 @ w3.T + b3.T)


if __name__ == "__main__":
    key = jax.random.PRNGKey(0)
    kx, kp = jax.random.split(key)

    batch = 8
    input_size = 7  # Titanic feature count (X_train_train.shape[1])

    x = jax.random.normal(kx, (batch, input_size), jnp.float32)
    params = init_params(kp, input_size)

    # bf16 x/W1 stream => loosened tolerance (accumulation/bias/sigmoid stay f32).
    TOL = dict(atol=1e-2, rtol=1e-2)

    out = jax.block_until_ready(fnn_forward(x, params))
    ref = fnn_reference(x, params)
    assert out.shape == (batch, 1)
    assert jnp.allclose(out, ref, **TOL)

    # Exercise the multi-tile grid + ragged batch-padding path (grid=(3,)).
    x2 = jax.random.normal(kx, (300, input_size), jnp.float32)
    out2 = jax.block_until_ready(fnn_forward(x2, params, tile_b=128))
    ref2 = fnn_reference(x2, params)
    assert out2.shape == (300, 1)
    assert jnp.allclose(out2, ref2, **TOL)

    # Exercise the default large-tile path with the >=2-tile split (grid=(2,)).
    x3 = jax.random.normal(kx, (1000, input_size), jnp.float32)
    out3 = jax.block_until_ready(fnn_forward(x3, params))
    ref3 = fnn_reference(x3, params)
    assert out3.shape == (1000, 1)
    assert jnp.allclose(out3, ref3, **TOL)

    print("KERNEL_OK")
</pallas_src>

<mosaic_0001>
module attributes {stable_mosaic.version = 11 : i64} {
  func.func @fnn_kernel(%arg0: i32, %arg1: memref<7x128xbf16, #tpu.memory_space<vmem>>, %arg2: memref<14x7xbf16, #tpu.memory_space<vmem>>, %arg3: memref<14x1xf32, #tpu.memory_space<vmem>>, %arg4: memref<14x14xf32, #tpu.memory_space<vmem>>, %arg5: memref<14x1xf32, #tpu.memory_space<vmem>>, %arg6: memref<1x14xf32, #tpu.memory_space<vmem>>, %arg7: memref<1x1xf32, #tpu.memory_space<vmem>>, %arg8: memref<1x128xf32, #tpu.memory_space<vmem>>) attributes {dimension_semantics = [#tpu.dimension_semantics<parallel>], iteration_bounds = array<i64: 1>, scalar_prefetch = 0 : i64, scratch_operands = 0 : i64, tpu.core_type = #tpu.core_type<tc>, window_params = [{transform_indices = @transform_0, window_bounds = array<i64: 7, 128>}, {pipeline_mode = #tpu.pipeline_mode<synchronous>, transform_indices = @transform_1, window_bounds = array<i64: 14, 7>}, {pipeline_mode = #tpu.pipeline_mode<synchronous>, transform_indices = @transform_2, window_bounds = array<i64: 14, 1>}, {pipeline_mode = #tpu.pipeline_mode<synchronous>, transform_indices = @transform_3, window_bounds = array<i64: 14, 14>}, {pipeline_mode = #tpu.pipeline_mode<synchronous>, transform_indices = @transform_4, window_bounds = array<i64: 14, 1>}, {pipeline_mode = #tpu.pipeline_mode<synchronous>, transform_indices = @transform_5, window_bounds = array<i64: 1, 14>}, {pipeline_mode = #tpu.pipeline_mode<synchronous>, transform_indices = @transform_6, window_bounds = array<i64: 1, 1>}, {transform_indices = @transform_7, window_bounds = array<i64: 1, 128>}]} {
    %c0 = arith.constant 0 : index
    %c0_0 = arith.constant 0 : index
    %0 = vector.load %arg2[%c0, %c0_0] : memref<14x7xbf16, #tpu.memory_space<vmem>>, vector<14x7xbf16>
    %c0_1 = arith.constant 0 : index
    %c0_2 = arith.constant 0 : index
    %1 = vector.load %arg1[%c0_1, %c0_2] : memref<7x128xbf16, #tpu.memory_space<vmem>>, vector<7x128xbf16>
    %cst = arith.constant dense<0.000000e+00> : vector<14x128xf32>
    %2 = tpu.matmul %0, %1, %cst {dimension_numbers = #tpu.dot_dimension_numbers<[1], [0], [0], [1], [0, 0, 1, 1], [], []>} : vector<14x7xbf16>, vector<7x128xbf16>, vector<14x128xf32> -> vector<14x128xf32>
    %c0_3 = arith.constant 0 : index
    %c0_4 = arith.constant 0 : index
    %3 = vector.load %arg3[%c0_3, %c0_4] : memref<14x1xf32, #tpu.memory_space<vmem>>, vector<14x1xf32>
    %4 = vector.broadcast %3 : vector<14x1xf32> to vector<14x128xf32>
    %5 = arith.addf %2, %4 : vector<14x128xf32>
    %cst_5 = arith.constant 0.000000e+00 : f32
    %6 = vector.broadcast %cst_5 : f32 to vector<14x128xf32>
    %7 = arith.maximumf %5, %6 : vector<14x128xf32>
    %c0_6 = arith.constant 0 : index
    %c0_7 = arith.constant 0 : index
    %8 = vector.load %arg4[%c0_6, %c0_7] : memref<14x14xf32, #tpu.memory_space<vmem>>, vector<14x14xf32>
    %cst_8 = arith.constant dense<0.000000e+00> : vector<14x128xf32>
    %9 = tpu.matmul %8, %7, %cst_8 {dimension_numbers = #tpu.dot_dimension_numbers<[1], [0], [0], [1], [0, 0, 1, 1], [], []>} : vector<14x14xf32>, vector<14x128xf32>, vector<14x128xf32> -> vector<14x128xf32>
    %c0_9 = arith.constant 0 : index
    %c0_10 = arith.constant 0 : index
    %10 = vector.load %arg5[%c0_9, %c0_10] : memref<14x1xf32, #tpu.memory_space<vmem>>, vector<14x1xf32>
    %11 = vector.broadcast %10 : vector<14x1xf32> to vector<14x128xf32>
    %12 = arith.addf %9, %11 : vector<14x128xf32>
    %cst_11 = arith.constant 0.000000e+00 : f32
    %13 = vector.broadcast %cst_11 : f32 to vector<14x128xf32>
    %14 = arith.maximumf %12, %13 : vector<14x128xf32>
    %c0_12 = arith.constant 0 : index
    %c0_13 = arith.constant 0 : index
    %15 = vector.load %arg6[%c0_12, %c0_13] : memref<1x14xf32, #tpu.memory_space<vmem>>, vector<1x14xf32>
    %cst_14 = arith.constant dense<0.000000e+00> : vector<1x128xf32>
    %16 = tpu.matmul %15, %14, %cst_14 {dimension_numbers = #tpu.dot_dimension_numbers<[1], [0], [0], [1], [0, 0, 1, 1], [], []>} : vector<1x14xf32>, vector<14x128xf32>, vector<1x128xf32> -> vector<1x128xf32>
    %c0_15 = arith.constant 0 : index
    %c0_16 = arith.constant 0 : index
    %17 = vector.load %arg7[%c0_15, %c0_16] : memref<1x1xf32, #tpu.memory_space<vmem>>, vector<1x1xf32>
    %18 = vector.broadcast %17 : vector<1x1xf32> to vector<1x128xf32>
    %19 = arith.addf %16, %18 : vector<1x128xf32>
    %20 = arith.negf %19 : vector<1x128xf32>
    %21 = math.exp %20 : vector<1x128xf32>
    %cst_17 = arith.constant 1.000000e+00 : f32
    %22 = vector.broadcast %cst_17 : f32 to vector<1x128xf32>
    %23 = arith.addf %22, %21 : vector<1x128xf32>
    %24 = arith.divf %22, %23 : vector<1x128xf32>
    %c0_18 = arith.constant 0 : index
    %c0_19 = arith.constant 0 : index
    %25 = vector.load %arg8[%c0_18, %c0_19] : memref<1x128xf32, #tpu.memory_space<vmem>>, vector<1x128xf32>
    tpu.vector_store %arg8[%c0_18, %c0_19], %24 {strides = array<i32>} : memref<1x128xf32, #tpu.memory_space<vmem>>, vector<1x128xf32>,
    return
  }
  func.func @transform_0(%arg0: i32) -> (i32, i32) {
    %c0_i32 = arith.constant 0 : i32
    %c0_i32_0 = arith.constant 0 : i32
    return %c0_i32, %arg0 : i32, i32
  }
  func.func @transform_1(%arg0: i32) -> (i32, i32) {
    %c0_i32 = arith.constant 0 : i32
    %c0_i32_0 = arith.constant 0 : i32
    %c0_i32_1 = arith.constant 0 : i32
    return %c0_i32, %c0_i32_0 : i32, i32
  }
  func.func @transform_2(%arg0: i32) -> (i32, i32) {
    %c0_i32 = arith.constant 0 : i32
    %c0_i32_0 = arith.constant 0 : i32
    %c0_i32_1 = arith.constant 0 : i32
    return %c0_i32, %c0_i32_0 : i32, i32
  }
  func.func @transform_3(%arg0: i32) -> (i32, i32) {
    %c0_i32 = arith.constant 0 : i32
    %c0_i32_0 = arith.constant 0 : i32
    %c0_i32_1 = arith.constant 0 : i32
    return %c0_i32, %c0_i32_0 : i32, i32
  }
  func.func @transform_4(%arg0: i32) -> (i32, i32) {
    %c0_i32 = arith.constant 0 : i32
    %c0_i32_0 = arith.constant 0 : i32
    %c0_i32_1 = arith.constant 0 : i32
    return %c0_i32, %c0_i32_0 : i32, i32
  }
  func.func @transform_5(%arg0: i32) -> (i32, i32) {
    %c0_i32 = arith.constant 0 : i32
    %c0_i32_0 = arith.constant 0 : i32
    %c0_i32_1 = arith.constant 0 : i32
    return %c0_i32, %c0_i32_0 : i32, i32
  }
  func.func @transform_6(%arg0: i32) -> (i32, i32) {
    %c0_i32 = arith.constant 0 : i32
    %c0_i32_0 = arith.constant 0 : i32
    %c0_i32_1 = arith.constant 0 : i32
    return %c0_i32, %c0_i32_0 : i32, i32
  }
  func.func @transform_7(%arg0: i32) -> (i32, i32) {
    %c0_i32 = arith.constant 0 : i32
    %c0_i32_0 = arith.constant 0 : i32
    return %c0_i32, %arg0 : i32, i32
  }
}

</mosaic_0001>

<bundles_post_ra>
// kernel: tpu_custom_call.1
= control target key start
LH: loop header
LB: loop body
LE: loop exit
PB: predicated region body
PF: predicated region fallthrough
CT: control target
= control target key end

     0   :  { %s329_s0 = inlined_call_operand.vmem [shape: bf16[7,128], index: 0, kind: input, shape index: {}]   ;;  %s330_s1 = inlined_call_operand.vmem [shape: bf16[14,7], index: 1, kind: input, shape index: {}]   ;;  %s331_s2 = inlined_call_operand.vmem [shape: f32[14,1], index: 2, kind: input, shape index: {}]   ;;  %s332_s3 = inlined_call_operand.vmem [shape: f32[14,14], index: 3, kind: input, shape index: {}]   ;;  %s333_s4 = inlined_call_operand.vmem [shape: f32[14,1], index: 4, kind: input, shape index: {}]   ;;  %s334_s5 = inlined_call_operand.vmem [shape: f32[1,14], index: 5, kind: input, shape index: {}]   ;;  %s335_s6 = inlined_call_operand.<no memory space> [shape: f32[1,1], index: 6, kind: input, shape index: {}]   ;;  %s336_s7 = inlined_call_operand.hbm [shape: f32[1,128], index: 7, kind: output, shape index: {}]  }
   0x1   :  { %v12_v0 = vstv %s335_s6 }
   0x2   :  { %13 = vst [vmem:[#allocation2] sm:$0x1] %v12_v0 }
   0x3   :  { %v32_v1 = vld [vmem:[%s329_s0] sm:$0xf]  ;;  %vm54_vm0 = vcmask 1042432   ;;  %vm55_vm1 = vcmask 1043456   ;;  %v245_v2 = vmov 65535   ;;  %v246_v7 = vmov 0  }
   0x4   :  { %v56_v3 = vsel %vm54_vm0, 4294967295, %v245_v2  ;;  %v199_v4 = vld [vmem:[%s330_s1] sm:$0xf]  ;;  %v208_v5 = vld [vmem:[%s330_s1] sm:$0x70]  ;;  %212 = vset.pattern.permute.xlu0 %v246_v7  ;;  %213 = vset.pattern.permute.xlu1 %v246_v7 }
   0x5   :  { %v57_v6 = vsel %vm55_vm1, %v56_v3, 0  ;;  %v34_v8 = vld [vmem:[%s331_s2 + $0x8] sm:$0x3f] }
   0x6   :  { %14 = vsyncpa [#allocation4], 0  ;;  %v59_v9 = vand.u32 %v57_v6, %v32_v1  ;;  %42 = vperm.xlu0 %212, %v34_v8   ;;  %214 = vset.pattern.permute.xlu2 %v246_v7  ;;  %v200_v10 = vor.u32 %v208_v5, %v199_v4  ;;  %vm50_vm2 = vcmask 56320   ;;  %v33_v11 = vld [vmem:[%s331_s2] sm:$0xff]  ;;  %v80_v12 = vld [vmem:[%s333_s4 + $0x8] sm:$0x3f] }
   0x7   :  { %88 = vperm.xlu1 %213, %v80_v12   ;;  %v79_v13 = vld [vmem:[%s333_s4] sm:$0xff]  ;;  %vm98_vm3 = vcmask 1045504   ;;  %vm91_vm4 = vcmask 113664   ;;  %v78_v23 = vld [vmem:[%s332_s3 + $0x8] sm:$0x3f]  ;;  %s188_s20 = sshll.u32 %s336_s7, 4  ;;  %s189_s20 = int_to_ptr.hbm [resolvable:$true] %s188_s20 }
   0x8   :  { %68 = vmatpush.bf16.msra.mxu0 %v59_v9  ;;  %v77_v22 = vld [vmem:[%s332_s3] sm:$0xff]  ;;  %s247_s3 = smov [#allocation3]  }
   0x9   :  { %v128_v24 = vld [vmem:[#allocation2] sm:$0x1] }
   0xa   :  { %131 = vperm.xlu2 %214, %v128_v24   ;;  %v127_v33 = vld [vmem:[%s334_s5] sm:$0x1]  ;;  %s186_s5 = sshll.u32 %s247_s3, 4  ;;  %s187_s5 = int_to_ptr.vmem [resolvable:$true] %s186_s5 }
   0xb   :  { %201 = vmatmul.msk.bf16.vlgmr.msra.gmra.mxu0 %vm50_vm2, %v200_v10 }
   0xe   :  { %37 = vperm.xlu0 %212, %v33_v11  }
   0xf   :  { %83 = vperm.xlu1 %213, %v79_v13  }
  0x64   :  { %v132_v34 = vpop.permute.xlu2 %131 }
  0x65   :  { %v134_v35 = vperm.slane %v132_v34, 0 }
  0x78   :  { %v43_v14 = vpop.permute.xlu0 %42 }
  0x79   :  { %v89_v25 = vpop.permute.xlu1 %88 }
  0x80   :  { %v38_v16 = vpop.permute.xlu0 %37 }
  0x81   :  { %v84_v27 = vpop.permute.xlu1 %83 }
  0x88   :  { %v70_v15 = vpop.f32.mrf.mxu0 }
  0x89   :  { %v71_v18 = vadd.f32 %v70_v15, %v38_v16 }
  0x8b   :  { %v75_v21 = vmax.f32 %v71_v18, 0.0 }
  0x90   :  { %v72_v17 = vpop.f32.mrf.mxu0 }
  0x91   :  { %v73_v19 = vadd.f32 %v72_v17, %v43_v14 }
  0x93   :  { %v76_v20 = vmax.f32 %v73_v19, 0.0 }
  0x95   :  { %202 = vmatpush.msk.msra.mxu1 %vm98_vm3, %v76_v20 }
  0x97   :  { %117 = vmatpush.msra.mxu1 %v75_v21 }
  0x98   :  { %203 = vmatmul.msk.f32.vlgmr.msra.gmra.mxu1 %vm91_vm4, %v77_v22 }
  0xa0   :  { %204 = vmatmul.msk.f32.gmra.mxu1 %vm91_vm4, %v78_v23 }
 0x115   :  { %v119_v26 = vpop.f32.mrf.mxu1 }
 0x116   :  { %v120_v29 = vadd.f32 %v119_v26, %v84_v27 }
 0x118   :  { %v125_v32 = vmax.f32 %v120_v29, 0.0 }
 0x11d   :  { %v122_v28 = vpop.f32.mrf.mxu1 }
 0x11e   :  { %v123_v30 = vadd.f32 %v122_v28, %v89_v25 }
 0x120   :  { %v126_v31 = vmax.f32 %v123_v30, 0.0 }
 0x122   :  { %205 = vmatpush.msk.msra.mxu2 %vm98_vm3, %v126_v31 }
 0x124   :  { %156 = vmatpush.msra.mxu2 %v125_v32 }
 0x125   :  { %206 = vmatmul.msk.f32.vlgmr.msra.gmra.mxu2 %vm91_vm4, %v127_v33 }
 0x1a8   :  { %v158_v36 = vpop.f32.mrf.mxu2 }
 0x1a9   :  { %v159_v37 = vadd.f32 %v158_v36, %v134_v35 }
 0x1ab   :  { %v207_v38 = vmul.f32 -1.442695, %v159_v37 }
 0x1ad   :  { %215 = vpow2.f32 %v207_v38 }
 0x1b3   :  { %v216_v39 = vpop.eup %215 }
 0x1b4   :  { %v164_v40 = vadd.f32 1.0, %v216_v39 }
 0x1b6   :  { %217 = vrcp.f32 %v164_v40  ;;  %v176_v44 = vand.u32 2147483648, %v164_v40  ;;  %v174_v46 = vand.u32 2147483647, %v164_v40  ;;  %vm170_vm6 = vweird.f32 %v164_v40 }
 0x1b8   :  { %v177_v48 = vor.u32 1.1754944e-38, %v176_v44  ;;  %vm175_vm8 = vcmp.eq.f32.partialorder %v174_v46, 8.507059e+37 }
 0x1bc   :  { %v218_v41 = vpop.eup %217 }
 0x1bd   :  { %v166_v42 = vmul.f32 %v218_v41, %v164_v40  ;;  %vm171_vm5 = vweird.f32 %v218_v41 }
 0x1be   :  { %vm172_vm7 = vmor %vm170_vm6, %vm171_vm5 }
 0x1bf   :  { %v167_v43 = vsub.f32 1.0, %v166_v42 }
 0x1c1   :  { %v168_v45 = vmul.f32 %v218_v41, %v167_v43 }
 0x1c3   :  { %v169_v47 = vadd.f32 %v218_v41, %v168_v45 }
 0x1c5   :  { %v173_v49 = vsel %vm172_vm7, %v218_v41, %v169_v47 }
 0x1c6   :  { %v178_v50 = vsel %vm175_vm8, %v177_v48, %v173_v49 }
 0x1c7   :  { %180 = vst [vmem:[#allocation3] sm:$0x1] %v178_v50 }
 0x1c8   :  { %191 = dma.vmem_to_hbm [thread:$0]  %s187_s5, 16, %s189_s20, [#allocation4]  }
 0x1c9   :  { %243 = dma.done.wait [#allocation4], 16  }
 0x1ca   :  { %244 = vsyncadd [#allocation4], 4294967280 }
 0x1cb   :  { %196 = vsyncpa [#allocation4], 1 }

</bundles_post_ra>
